<compile_context>
chip_gen: v7x
topology: tpu7x:2x2x1
jax: 0.10.0
libtpu: 0.0.40
codegen_flags: <defaults>
</compile_context>

<pallas_src>
import jax
import jax.numpy as jnp
from jax.experimental import pallas as pl
from jax.experimental.pallas import tpu as pltpu

_LANES = 128


def _loss_partial_kernel(x_ref, lab_ref, out_ref, p_ref):
    """One row-block of the streaming reduction.

    x_ref   : (rows_blk, 256) logits, natural interleaved order.
    lab_ref : (rows_blk, 128) int8 labels (0/1; 2 == padding, masked out).
    out_ref : (8, 128) f32 partial accumulators for this core-slice
              (row 0: sum nll over label==1, 1: sum nll over label==0,
               2: TP count, 3: TN count, 4: #positives; rows 5..7 stay zero).
    p_ref   : (256, 128) f32 scratch holding the +/-1 de-interleave matrix.
    """
    i = pl.program_id(1)

    @pl.when(i == 0)
    def _init():
        # P[2j, j] = -1, P[2j+1, j] = +1, else 0  =>  (X @ P)[r, j] = x1 - x0.
        r = jax.lax.broadcasted_iota(jnp.int32, (2 * _LANES, _LANES), 0)
        c = jax.lax.broadcasted_iota(jnp.int32, (2 * _LANES, _LANES), 1)
        p_ref[...] = jnp.where(r == 2 * c + 1, 1.0,
                               jnp.where(r == 2 * c, -1.0, 0.0)).astype(jnp.float32)
        out_ref[...] = jnp.zeros_like(out_ref)

    x = x_ref[...].astype(jnp.float32)        # transport dtype -> f32
    lab = lab_ref[...].astype(jnp.int32)      # int8 transport -> i32 compares

    # De-interleave + subtract on the (otherwise idle) MXU: d = x1 - x0,
    # dense over all 128 lanes.
    d = jnp.dot(x, p_ref[...], preferred_element_type=jnp.float32)

    is_pos = lab == 1                          # padded rows (label 2) drop out
    is_neg = lab == 0

    # nll = -log softmax(x)[label] = softplus(x_other - x_label), stable form
    # with shared |d| and shared softplus tail:
    #   softplus(-d) = 0.5*(|d| - d) + log(1 + exp(-|d|))   (label == 1)
    #   softplus(+d) = 0.5*(|d| + d) + log(1 + exp(-|d|))   (label == 0)
    absd = jnp.abs(d)
    tail = jnp.log(1.0 + jnp.exp(-absd))       # EUP (log1p marginally better,
                                               # log() is the proven lowering)
    half_a = 0.5 * absd
    half_d = 0.5 * d
    nll_pos = (half_a - half_d) + tail
    nll_neg = (half_a + half_d) + tail

    # argmax with first-index tie-break => predict class 1 only if x1 > x0.
    pred_pos = d > 0.0
    pred_neg = d <= 0.0

    def acc(row, q):                           # (rows_blk, 128) -> (1, 128)
        out_ref[row:row + 1, :] += jnp.sum(q, axis=0, keepdims=True)

    # jnp.where (select) also shields the sums from any garbage in the
    # out-of-bounds tail of the last logits block (its labels are all 2).
    acc(0, jnp.where(is_pos, nll_pos, 0.0))                          # nll | y=1
    acc(1, jnp.where(is_neg, nll_neg, 0.0))                          # nll | y=0
    acc(2, jnp.logical_and(is_pos, pred_pos).astype(jnp.float32))    # TP count
    acc(3, jnp.logical_and(is_neg, pred_neg).astype(jnp.float32))    # TN count
    acc(4, is_pos.astype(jnp.float32))                               # #positives


def _ceil_to(a, b):
    return -(-a // b) * b


def pallas_loss(out, labels, total_positives, total_len, *,
                block_rows=2048, num_core_splits=2, vmem_limit_bytes=None):
    """Forward pass of the PyTorch `Loss` module.

    out    : (N, 2) logits (f32 native; bf16 transport also accepted).
    labels : (N,) integer class ids in {0, 1}.
    total_positives / total_len : dataset-level scalars (loader.dataset stats).

    block_rows ~ 2048 fits the 16 MiB v5e scoped-VMEM default; raise to
    4096-8192 together with vmem_limit_bytes on v6e/v7x.
    """
    N, C = out.shape
    if C != 2:
        raise ValueError("Loss kernel is specialized to 2 classes.")

    # ---- logits: keep the natural interleaved memory order.  Contiguous
    # reshape is free; one pad pass only when N % 128 != 0.
    rows = max(1, -(-N // _LANES))
    flat = out.reshape(-1)                                # x0_0,x1_0,x0_1,x1_1,...
    pad_e = rows * 2 * _LANES - 2 * N
    if pad_e:
        flat = jnp.pad(flat, (0, pad_e))
    xi = flat.reshape(rows, 2 * _LANES)

    # ---- grid geometry (no over-padding of logits to a block multiple).
    rows_blk = min(int(block_rows), _ceil_to(rows, 32))
    rows_blk = max(32, (rows_blk // 32) * 32)             # int8 (32,128) tile
    n_blocks = -(-rows // rows_blk)
    splits = max(1, int(num_core_splits))
    bpc = -(-n_blocks // splits)                          # blocks per core-slice
    total_rows = splits * bpc * rows_blk

    # ---- labels: int8 transport, padded with class id 2 over the full
    # scheduled grid so OOB / excess blocks self-mask out of every sum.
    lab = labels.astype(jnp.int8)
    lab = jnp.pad(lab, (0, total_rows * _LANES - N), constant_values=2)
    lab = lab.reshape(total_rows, _LANES)

    max_blk = n_blocks - 1

    def x_map(c, i):
        # Clamp the (at most one per slice) fully out-of-range excess block;
        # its labels are all 2, so whatever it re-reads contributes nothing.
        return (jnp.minimum(c * bpc + i, max_blk), 0)

    def lab_map(c, i):
        return (c * bpc + i, 0)

    cp_kwargs = dict(dimension_semantics=("parallel", "arbitrary"))
    if vmem_limit_bytes is not None:
        cp_kwargs["vmem_limit_bytes"] = int(vmem_limit_bytes)

    partials = pl.pallas_call(
        _loss_partial_kernel,
        out_shape=jax.ShapeDtypeStruct((8 * splits, _LANES), jnp.float32),
        grid=(splits, bpc),
        in_specs=[
            pl.BlockSpec((rows_blk, 2 * _LANES), x_map),
            pl.BlockSpec((rows_blk, _LANES), lab_map),
        ],
        out_specs=pl.BlockSpec((8, _LANES), lambda c, i: (c, 0)),
        scratch_shapes=[pltpu.VMEM((2 * _LANES, _LANES), jnp.float32)],
        compiler_params=pltpu.CompilerParams(**cp_kwargs),
    )(xi, lab)

    # ---- tiny scalar epilogue (plain JAX over ~1 KiB of partials).
    sums = partials.reshape(splits, 8, _LANES).sum(axis=(0, 2))
    s_nll_pos = sums[0]           # sum of nll over label==1 rows
    s_nll_neg = sums[1]           # sum of nll over label==0 rows
    tp_cnt = sums[2]
    tn_cnt = sums[3]
    num_pos = sums[4]

    totpos = jnp.asarray(total_positives, jnp.float32)
    totlen = jnp.asarray(total_len, jnp.float32)
    n_f = jnp.float32(N)

    true_positives = tp_cnt / totpos
    true_negatives = tn_cnt / (totlen - totpos)

    pos_frac = num_pos / n_f
    neg_frac = 1.0 - pos_frac
    zero_pos = pos_frac == 0.0                 # `if pos_frac == 0:` branch
    pos_frac = jnp.where(zero_pos, 0.5, pos_frac)
    neg_frac = jnp.where(zero_pos, 0.5, neg_frac)
    true_positives = jnp.where(zero_pos, 1.0, true_positives)

    addloss = jax.lax.rsqrt(true_positives * true_negatives) - 1.0

    # Weighted-mean CE with class weights [pos_frac, neg_frac]:
    #   sum_i w_{y_i} * nll_i / sum_i w_{y_i}
    sum_wnll = pos_frac * s_nll_neg + neg_frac * s_nll_pos
    sum_w = pos_frac * (n_f - num_pos) + neg_frac * num_pos
    return sum_wnll / sum_w + addloss


def _reference_loss(out, labels, total_positives, total_len):
    """Pure-JAX replica of the PyTorch module (for verification)."""
    logits = out.astype(jnp.float32)
    labels = labels.astype(jnp.int32)
    n = labels.shape[0]
    pred = jnp.argmax(logits, axis=-1)
    tp = jnp.sum(jnp.logical_and(pred == 1, pred == labels)).astype(jnp.float32) / total_positives
    tn = jnp.sum(jnp.logical_and(pred == 0, pred == labels)).astype(jnp.float32) / (
        total_len - total_positives)
    num_pos = jnp.sum(labels).astype(jnp.float32)
    pos_frac = num_pos / n
    neg_frac = 1.0 - pos_frac
    zero = pos_frac == 0.0
    pos_frac = jnp.where(zero, 0.5, pos_frac)
    neg_frac = jnp.where(zero, 0.5, neg_frac)
    tp = jnp.where(zero, 1.0, tp)
    addloss = (tp * tn) ** -0.5 - 1.0
    logp = jax.nn.log_softmax(logits, axis=-1)
    nll = -jnp.take_along_axis(logp, labels[:, None], axis=-1)[:, 0]
    w = jnp.where(labels == 1, neg_frac, pos_frac)
    ce = jnp.sum(w * nll) / jnp.sum(w)
    return ce + addloss


if __name__ == "__main__":
    key = jax.random.PRNGKey(0)
    # Small example batch; N not a multiple of 128 and a small block size so the
    # run exercises padding, multiple row-blocks, both core slices and the
    # clamped excess-block path.
    N, C = 10000, 2

    k1, k2 = jax.random.split(key)
    labels = (jax.random.uniform(k1, (N,)) > 0.5).astype(jnp.int32)
    # guarantee both classes are present so TP/TN counts are non-zero
    labels = labels.at[0].set(0).at[1].set(1)

    noise = jax.random.normal(k2, (N, C), dtype=jnp.float32) * 0.3
    logits = 2.0 * jax.nn.one_hot(labels, C, dtype=jnp.float32) + noise

    # dataset-level constants (stand-ins for total_positives(loader.dataset)
    # and total_len(loader.dataset))
    total_positives_ds = 4096.0
    total_len_ds = 20000.0

    loss_fn = jax.jit(lambda o, l: pallas_loss(
        o, l, total_positives_ds, total_len_ds, block_rows=32))
    loss = jax.block_until_ready(loss_fn(logits, labels))

    ref = jax.block_until_ready(
        _reference_loss(logits, labels, total_positives_ds, total_len_ds))

    if (not bool(jnp.isfinite(loss))) or abs(float(loss) - float(ref)) > (
            1e-4 + 1e-3 * abs(float(ref))):
        raise AssertionError(f"mismatch: kernel={float(loss)} ref={float(ref)}")
    print("KERNEL_OK")
</pallas_src>

<mosaic_0001>
module attributes {stable_mosaic.version = 11 : i64} {
  func.func @_loss_partial_kernel(%arg0: i32, %arg1: i32, %arg2: memref<32x256xf32, #tpu.memory_space<vmem>>, %arg3: memref<32x128xi8, #tpu.memory_space<vmem>>, %arg4: memref<8x128xf32, #tpu.memory_space<vmem>>, %arg5: memref<256x128xf32, #tpu.memory_space<vmem>>) attributes {dimension_semantics = [#tpu.dimension_semantics<parallel>, #tpu.dimension_semantics<arbitrary>], iteration_bounds = array<i64: 2, 2>, scalar_prefetch = 0 : i64, scratch_operands = 1 : i64, tpu.core_type = #tpu.core_type<tc>, window_params = [{transform_indices = @transform_0, window_bounds = array<i64: 32, 256>}, {transform_indices = @transform_1, window_bounds = array<i64: 32, 128>}, {transform_indices = @transform_2, window_bounds = array<i64: 8, 128>}]} {
    %c0_i32 = arith.constant 0 : i32
    %0 = arith.cmpi eq, %arg1, %c0_i32 : i32
    %1 = arith.extui %0 : i1 to i32
    %c0_i32_0 = arith.constant 0 : i32
    %2 = arith.cmpi ne, %1, %c0_i32_0 : i32
    scf.if %2 {
      %68 = tpu.iota {dimensions = array<i32: 0>} : vector<256x128xi32>
      %69 = tpu.iota {dimensions = array<i32: 1>} : vector<256x128xi32>
      %c2_i32 = arith.constant 2 : i32
      %70 = vector.broadcast %c2_i32 : i32 to vector<256x128xi32>
      %71 = arith.muli %70, %69 : vector<256x128xi32>
      %c1_i32_36 = arith.constant 1 : i32
      %72 = vector.broadcast %c1_i32_36 : i32 to vector<256x128xi32>
      %73 = arith.addi %71, %72 : vector<256x128xi32>
      %74 = arith.cmpi eq, %68, %73 : vector<256x128xi32>
      %c2_i32_37 = arith.constant 2 : i32
      %75 = vector.broadcast %c2_i32_37 : i32 to vector<256x128xi32>
      %76 = arith.muli %75, %69 : vector<256x128xi32>
      %77 = arith.cmpi eq, %68, %76 : vector<256x128xi32>
      %cst_38 = arith.constant -1.000000e+00 : f32
      %cst_39 = arith.constant 0.000000e+00 : f32
      %78 = vector.broadcast %cst_38 : f32 to vector<256x128xf32>
      %79 = vector.broadcast %cst_39 : f32 to vector<256x128xf32>
      %80 = arith.select %77, %78, %79 : vector<256x128xi1>, vector<256x128xf32>
      %cst_40 = arith.constant 1.000000e+00 : f32
      %81 = vector.broadcast %cst_40 : f32 to vector<256x128xf32>
      %82 = arith.select %74, %81, %80 : vector<256x128xi1>, vector<256x128xf32>
      %c0_41 = arith.constant 0 : index
      %c0_42 = arith.constant 0 : index
      %83 = vector.load %arg5[%c0_41, %c0_42] : memref<256x128xf32, #tpu.memory_space<vmem>>, vector<256x128xf32>
      tpu.vector_store %arg5[%c0_41, %c0_42], %82 {strides = array<i32>} : memref<256x128xf32, #tpu.memory_space<vmem>>, vector<256x128xf32>,
      %cst_43 = arith.constant 0.000000e+00 : f32
      %84 = vector.broadcast %cst_43 : f32 to vector<8x128xf32>
      %c0_44 = arith.constant 0 : index
      %c0_45 = arith.constant 0 : index
      %85 = vector.load %arg4[%c0_44, %c0_45] : memref<8x128xf32, #tpu.memory_space<vmem>>, vector<8x128xf32>
      tpu.vector_store %arg4[%c0_44, %c0_45], %84 {strides = array<i32>} : memref<8x128xf32, #tpu.memory_space<vmem>>, vector<8x128xf32>,
    } else {
    }
    %c0 = arith.constant 0 : index
    %c0_1 = arith.constant 0 : index
    %3 = vector.load %arg2[%c0, %c0_1] : memref<32x256xf32, #tpu.memory_space<vmem>>, vector<32x256xf32>
    %c0_2 = arith.constant 0 : index
    %c0_3 = arith.constant 0 : index
    %4 = vector.load %arg3[%c0_2, %c0_3] : memref<32x128xi8, #tpu.memory_space<vmem>>, vector<32x128xi8>
    %5 = arith.extsi %4 : vector<32x128xi8> to vector<32x128xi32>
    %c0_4 = arith.constant 0 : index
    %c0_5 = arith.constant 0 : index
    %6 = vector.load %arg5[%c0_4, %c0_5] : memref<256x128xf32, #tpu.memory_space<vmem>>, vector<256x128xf32>
    %cst = arith.constant dense<0.000000e+00> : vector<32x128xf32>
    %7 = tpu.matmul %3, %6, %cst {dimension_numbers = #tpu.dot_dimension_numbers<[1], [0], [0], [1], [0, 0, 1, 1], [], []>} : vector<32x256xf32>, vector<256x128xf32>, vector<32x128xf32> -> vector<32x128xf32>
    %c1_i32 = arith.constant 1 : i32
    %8 = vector.broadcast %c1_i32 : i32 to vector<32x128xi32>
    %9 = arith.cmpi eq, %5, %8 : vector<32x128xi32>
    %c0_i32_6 = arith.constant 0 : i32
    %10 = vector.broadcast %c0_i32_6 : i32 to vector<32x128xi32>
    %11 = arith.cmpi eq, %5, %10 : vector<32x128xi32>
    %12 = math.absf %7 : vector<32x128xf32>
    %cst_7 = arith.constant 0.000000e+00 : f32
    %13 = vector.broadcast %cst_7 : f32 to vector<32x128xf32>
    %14 = arith.subf %13, %12 : vector<32x128xf32>
    %15 = math.exp %14 : vector<32x128xf32>
    %cst_8 = arith.constant 1.000000e+00 : f32
    %16 = vector.broadcast %cst_8 : f32 to vector<32x128xf32>
    %17 = arith.addf %16, %15 : vector<32x128xf32>
    %18 = math.log %17 : vector<32x128xf32>
    %cst_9 = arith.constant 5.000000e-01 : f32
    %19 = vector.broadcast %cst_9 : f32 to vector<32x128xf32>
    %20 = arith.mulf %19, %12 : vector<32x128xf32>
    %cst_10 = arith.constant 5.000000e-01 : f32
    %21 = vector.broadcast %cst_10 : f32 to vector<32x128xf32>
    %22 = arith.mulf %21, %7 : vector<32x128xf32>
    %23 = arith.subf %20, %22 : vector<32x128xf32>
    %24 = arith.addf %23, %18 : vector<32x128xf32>
    %25 = arith.addf %20, %22 : vector<32x128xf32>
    %26 = arith.addf %25, %18 : vector<32x128xf32>
    %cst_11 = arith.constant 0.000000e+00 : f32
    %27 = vector.broadcast %cst_11 : f32 to vector<32x128xf32>
    %28 = arith.cmpf ogt, %7, %27 : vector<32x128xf32>
    %cst_12 = arith.constant 0.000000e+00 : f32
    %29 = vector.broadcast %cst_12 : f32 to vector<32x128xf32>
    %30 = arith.cmpf ole, %7, %29 : vector<32x128xf32>
    %cst_13 = arith.constant 0.000000e+00 : f32
    %31 = vector.broadcast %cst_13 : f32 to vector<32x128xf32>
    %32 = arith.select %9, %24, %31 : vector<32x128xi1>, vector<32x128xf32>
    %c0_14 = arith.constant 0 : index
    %c0_15 = arith.constant 0 : index
    %33 = vector.load %arg4[%c0_14, %c0_15] : memref<8x128xf32, #tpu.memory_space<vmem>>, vector<1x128xf32>
    %cst_16 = arith.constant dense<0.000000e+00> : vector<128xf32>
    %34 = vector.multi_reduction <add>, %32, %cst_16 [0] : vector<32x128xf32> to vector<128xf32>
    %35 = vector.shape_cast %34 : vector<128xf32> to vector<1x128xf32>
    %36 = arith.addf %33, %35 : vector<1x128xf32>
    %c0_17 = arith.constant 0 : index
    %c0_18 = arith.constant 0 : index
    %37 = vector.load %arg4[%c0_17, %c0_18] : memref<8x128xf32, #tpu.memory_space<vmem>>, vector<1x128xf32>
    tpu.vector_store %arg4[%c0_17, %c0_18], %36 {strides = array<i32>} : memref<8x128xf32, #tpu.memory_space<vmem>>, vector<1x128xf32>,
    %cst_19 = arith.constant 0.000000e+00 : f32
    %38 = vector.broadcast %cst_19 : f32 to vector<32x128xf32>
    %39 = arith.select %11, %26, %38 : vector<32x128xi1>, vector<32x128xf32>
    %c1 = arith.constant 1 : index
    %c0_20 = arith.constant 0 : index
    %40 = vector.load %arg4[%c1, %c0_20] : memref<8x128xf32, #tpu.memory_space<vmem>>, vector<1x128xf32>
    %cst_21 = arith.constant dense<0.000000e+00> : vector<128xf32>
    %41 = vector.multi_reduction <add>, %39, %cst_21 [0] : vector<32x128xf32> to vector<128xf32>
    %42 = vector.shape_cast %41 : vector<128xf32> to vector<1x128xf32>
    %43 = arith.addf %40, %42 : vector<1x128xf32>
    %c1_22 = arith.constant 1 : index
    %c0_23 = arith.constant 0 : index
    %44 = vector.load %arg4[%c1_22, %c0_23] : memref<8x128xf32, #tpu.memory_space<vmem>>, vector<1x128xf32>
    tpu.vector_store %arg4[%c1_22, %c0_23], %43 {strides = array<i32>} : memref<8x128xf32, #tpu.memory_space<vmem>>, vector<1x128xf32>,
    %45 = arith.andi %9, %28 : vector<32x128xi1>
    %46 = arith.extui %45 : vector<32x128xi1> to vector<32x128xi32>
    %47 = arith.sitofp %46 : vector<32x128xi32> to vector<32x128xf32>
    %c2 = arith.constant 2 : index
    %c0_24 = arith.constant 0 : index
    %48 = vector.load %arg4[%c2, %c0_24] : memref<8x128xf32, #tpu.memory_space<vmem>>, vector<1x128xf32>
    %cst_25 = arith.constant dense<0.000000e+00> : vector<128xf32>
    %49 = vector.multi_reduction <add>, %47, %cst_25 [0] : vector<32x128xf32> to vector<128xf32>
    %50 = vector.shape_cast %49 : vector<128xf32> to vector<1x128xf32>
    %51 = arith.addf %48, %50 : vector<1x128xf32>
    %c2_26 = arith.constant 2 : index
    %c0_27 = arith.constant 0 : index
    %52 = vector.load %arg4[%c2_26, %c0_27] : memref<8x128xf32, #tpu.memory_space<vmem>>, vector<1x128xf32>
    tpu.vector_store %arg4[%c2_26, %c0_27], %51 {strides = array<i32>} : memref<8x128xf32, #tpu.memory_space<vmem>>, vector<1x128xf32>,
    %53 = arith.andi %11, %30 : vector<32x128xi1>
    %54 = arith.extui %53 : vector<32x128xi1> to vector<32x128xi32>
    %55 = arith.sitofp %54 : vector<32x128xi32> to vector<32x128xf32>
    %c3 = arith.constant 3 : index
    %c0_28 = arith.constant 0 : index
    %56 = vector.load %arg4[%c3, %c0_28] : memref<8x128xf32, #tpu.memory_space<vmem>>, vector<1x128xf32>
    %cst_29 = arith.constant dense<0.000000e+00> : vector<128xf32>
    %57 = vector.multi_reduction <add>, %55, %cst_29 [0] : vector<32x128xf32> to vector<128xf32>
    %58 = vector.shape_cast %57 : vector<128xf32> to vector<1x128xf32>
    %59 = arith.addf %56, %58 : vector<1x128xf32>
    %c3_30 = arith.constant 3 : index
    %c0_31 = arith.constant 0 : index
    %60 = vector.load %arg4[%c3_30, %c0_31] : memref<8x128xf32, #tpu.memory_space<vmem>>, vector<1x128xf32>
    tpu.vector_store %arg4[%c3_30, %c0_31], %59 {strides = array<i32>} : memref<8x128xf32, #tpu.memory_space<vmem>>, vector<1x128xf32>,
    %61 = arith.extui %9 : vector<32x128xi1> to vector<32x128xi32>
    %62 = arith.sitofp %61 : vector<32x128xi32> to vector<32x128xf32>
    %c4 = arith.constant 4 : index
    %c0_32 = arith.constant 0 : index
    %63 = vector.load %arg4[%c4, %c0_32] : memref<8x128xf32, #tpu.memory_space<vmem>>, vector<1x128xf32>
    %cst_33 = arith.constant dense<0.000000e+00> : vector<128xf32>
    %64 = vector.multi_reduction <add>, %62, %cst_33 [0] : vector<32x128xf32> to vector<128xf32>
    %65 = vector.shape_cast %64 : vector<128xf32> to vector<1x128xf32>
    %66 = arith.addf %63, %65 : vector<1x128xf32>
    %c4_34 = arith.constant 4 : index
    %c0_35 = arith.constant 0 : index
    %67 = vector.load %arg4[%c4_34, %c0_35] : memref<8x128xf32, #tpu.memory_space<vmem>>, vector<1x128xf32>
    tpu.vector_store %arg4[%c4_34, %c0_35], %66 {strides = array<i32>} : memref<8x128xf32, #tpu.memory_space<vmem>>, vector<1x128xf32>,
    return
  }
  func.func @transform_0(%arg0: i32, %arg1: i32) -> (i32, i32) {
    %c2_i32 = arith.constant 2 : i32
    %0 = arith.muli %arg0, %c2_i32 : i32
    %1 = arith.addi %0, %arg1 : i32
    %c2_i32_0 = arith.constant 2 : i32
    %2 = arith.minsi %1, %c2_i32_0 : i32
    %c0_i32 = arith.constant 0 : i32
    %c0_i32_1 = arith.constant 0 : i32
    return %2, %c0_i32 : i32, i32
  }
  func.func @transform_1(%arg0: i32, %arg1: i32) -> (i32, i32) {
    %c2_i32 = arith.constant 2 : i32
    %0 = arith.muli %arg0, %c2_i32 : i32
    %1 = arith.addi %0, %arg1 : i32
    %c0_i32 = arith.constant 0 : i32
    %c0_i32_0 = arith.constant 0 : i32
    return %1, %c0_i32 : i32, i32
  }
  func.func @transform_2(%arg0: i32, %arg1: i32) -> (i32, i32) {
    %c0_i32 = arith.constant 0 : i32
    %c0_i32_0 = arith.constant 0 : i32
    return %arg0, %c0_i32 : i32, i32
  }
}

</mosaic_0001>

<bundles_post_ra>
// kernel: _lambda_.1
= control target key start
LH: loop header
LB: loop body
LE: loop exit
PB: predicated region body
PF: predicated region fallthrough
CT: control target
= control target key end

     0   :  { %s1058_s9 = smov 0   ;;  %s1060_s10 = smov 0   ;;  %s1421_s0 = inlined_call_operand.vmem [shape: f32[79,256], index: 0, kind: input, shape index: {}]   ;;  %s1422_s1 = inlined_call_operand.vmem [shape: s8[128,128], index: 1, kind: input, shape index: {}]   ;;  %s1423_s2 = inlined_call_operand.vmem [shape: f32[16,128], index: 2, kind: output, shape index: {}]  }
   0x1   :  { %s1062_s11 = smov 0   ;;  %s1064_s12 = smov 0  }
   0x2   :  { %s1066_s13 = smov 0  }
   0x3 LB: > { %s21_s14 = sadd.s32 1, %s1031_s11  ;;  %s24_s15 = sadd.s32 1, %s1035_s12  ;;  %s1039_s13 = sphi %s1066_s13, %s12_s13   ;;  %s1035_s12 = sphi %s1064_s12, %s1447_s12   ;;  %s1031_s11 = sphi %s1062_s11, %s1446_s11   ;;  %s1027_s10 = sphi %s1060_s10, %s1445_s10   ;;  %s1023_s9 = sphi %s1058_s9, %s1444_s9  }
   0x4   : > { %p22_p0 = scmp.ge.s32.totalorder %s21_s14, 2  ;;  %p827_p1 = scmp.ge.s32.totalorder %s1039_s13, 1 }
   0x5   : > { %p169_p2 = scmp.lt.s32.totalorder %s1039_s13, 5 }
   0x6   : > { %s1449_s14 = smov (%p22_p0, %s21_s14), 0  ;;  %s1451_s15 = smov (!%p22_p0, %s24_s15), %s1035_s12 }
   0x7   : > { %p170_p3 = pnand %p827_p1, %p169_p2  ;;  %p26_p4 = scmp.ge.s32.totalorder %s1451_s15, 2 }
   0x8   : > { %s828_s16 = sshll.u32 (!%p170_p3), %s1027_s10, 1  ;;  %p239_p5 = scmp.lt.s32.totalorder (!%p170_p3), %s1027_s10, 1 }
   0x9   : > { %s1453_s15 = smov (%p26_p4, %s1451_s15), 0  ;;  %173 = sbr.rel (%p170_p3) target bundleno = 377 (0x179), region = 28 }
   0xa   : > { %s207_s17 = sadd.s32 (!%p170_p3), %s1023_s9, %s828_s16  ;;  %p835_p9 = scmp.ne.s32.totalorder (!%p170_p3), %s1023_s9, 0 }
   0xb   : > { %p208_p6 = scmp.lt.s32.totalorder (!%p170_p3), %s207_s17, 2  ;;  %p233_p7 = scmp.lt.s32.totalorder (!%p170_p3), %s207_s17, 3 }
  0x10   : > { %s1455_s10 = smov (!%p239_p5, %s1027_s10), 1  ;;  %v247_v0 = vlaneseq (!%p835_p9)  ;;  %v1041_v1 = vmov (!%p835_p9), 0.0  }
  0x11   : > { %s209_s18 = scalar_select %p208_p6, %s207_s17, 2 }
  0x12   : > { %s1457_s17 = smov (!%p233_p7, %s207_s17), 3  ;;  %s834_s20 = sshll.u32 %s1455_s10, 3  ;;  %v1109_v2 = vshrl.u32 (!%p835_p9), %v247_v0, 7  ;;  %v281_v3 = vand.u32 (!%p835_p9), 127, %v247_v0 }
  0x13   : > { %s829_s19 = sshll.u32 %s209_s18, 2  ;;  %s833_s21 = sshll.u32 %s1457_s17, 3 }
  0x14   : > { %p216_p8 = scmp.lt.s32.totalorder %s829_s19, 9  ;;  %s1094_s24 = scalar_lea.vmem %s1422_s1, %s833_s21  ;;  %v1111_v4 = vmul.u32 (!%p835_p9), 2, %v281_v3  ;;  %v249_v5 = vadd.s32 (!%p835_p9), 8, %v1109_v2  ;;  %v250_v6 = vadd.s32 (!%p835_p9), 16, %v1109_v2  ;;  %v251_v7 = vadd.s32 (!%p835_p9), 24, %v1109_v2 }
  0x15   : > { %s1099_s27 = scalar_lea.vmem %s1423_s2, %s834_s20  ;;  %246 = sbr.rel (%p835_p9) target bundleno = 63 (0x3f), region = 32  ;;  %v252_v8 = vadd.s32 (!%p835_p9), 32, %v1109_v2  ;;  %v253_v9 = vadd.s32 (!%p835_p9), 40, %v1109_v2  ;;  %v254_v10 = vadd.s32 (!%p835_p9), 48, %v1109_v2  ;;  %v255_v11 = vadd.s32 (!%p835_p9), 56, %v1109_v2 }
  0x16   : > { %s1459_s19 = smov (!%p216_p8, %s829_s19), 9  ;;  %444 = vst [vmem:[%s1099_s27] sm:$0xff] (!%p835_p9), %v1041_v1  ;;  %v1121_v12 = vadd.s32 (!%p835_p9), 1, %v1111_v4  ;;  %vm316_vm0 = vcmp.eq.s32.totalorder (!%p835_p9), %v1109_v2, %v1111_v4  ;;  %vm317_vm1 = vcmp.eq.s32.totalorder (!%p835_p9), %v249_v5, %v1111_v4  ;;  %vm318_vm2 = vcmp.eq.s32.totalorder (!%p835_p9), %v250_v6, %v1111_v4 }
  0x17   : > { %s850_s28 = sshll.u32 %s1459_s19, 4  ;;  %v348_v13 = vsel (!%p835_p9), %vm316_vm0, -1.0, %v1041_v1  ;;  %v349_v14 = vsel (!%p835_p9), %vm317_vm1, -1.0, %v1041_v1  ;;  %v350_v15 = vsel (!%p835_p9), %vm318_vm2, -1.0, %v1041_v1  ;;  %vm319_vm3 = vcmp.eq.s32.totalorder (!%p835_p9), %v251_v7, %v1111_v4 }
  0x18   : > { %s1104_s3 = scalar_lea.vmem %s1421_s0, %s850_s28  ;;  %vm284_vm4 = vcmp.eq.s32.totalorder (!%p835_p9), %v1109_v2, %v1121_v12  ;;  %vm285_vm5 = vcmp.eq.s32.totalorder (!%p835_p9), %v249_v5, %v1121_v12  ;;  %vm286_vm6 = vcmp.eq.s32.totalorder (!%p835_p9), %v250_v6, %v1121_v12  ;;  %vm287_vm7 = vcmp.eq.s32.totalorder (!%p835_p9), %v251_v7, %v1121_v12 }
  0x19   : > { %v380_v16 = vsel (!%p835_p9), %vm284_vm4, 1.0, %v348_v13  ;;  %v381_v17 = vsel (!%p835_p9), %vm285_vm5, 1.0, %v349_v14  ;;  %v382_v18 = vsel (!%p835_p9), %vm286_vm6, 1.0, %v350_v15  ;;  %v351_v19 = vsel (!%p835_p9), %vm319_vm3, -1.0, %v1041_v1 }
  0x1a   : > { %412 = vst [vmem:[#allocation2] sm:$0xff] (!%p835_p9), %v380_v16  ;;  %413 = vst [vmem:[#allocation2 + $0x8] sm:$0xff] (!%p835_p9), %v381_v17  ;;  %v383_v20 = vsel (!%p835_p9), %vm287_vm7, 1.0, %v351_v19  ;;  %vm288_vm8 = vcmp.eq.s32.totalorder (!%p835_p9), %v252_v8, %v1121_v12  ;;  %vm320_vm9 = vcmp.eq.s32.totalorder (!%p835_p9), %v252_v8, %v1111_v4  ;;  %vm289_vm10 = vcmp.eq.s32.totalorder (!%p835_p9), %v253_v9, %v1121_v12 }
  0x1b   : > { %414 = vst [vmem:[#allocation2 + $0x10] sm:$0xff] (!%p835_p9), %v382_v18  ;;  %415 = vst [vmem:[#allocation2 + $0x18] sm:$0xff] (!%p835_p9), %v383_v20  ;;  %v352_v21 = vsel (!%p835_p9), %vm320_vm9, -1.0, %v1041_v1  ;;  %vm321_vm11 = vcmp.eq.s32.totalorder (!%p835_p9), %v253_v9, %v1111_v4  ;;  %vm290_vm12 = vcmp.eq.s32.totalorder (!%p835_p9), %v254_v10, %v1121_v12  ;;  %vm322_vm13 = vcmp.eq.s32.totalorder (!%p835_p9), %v254_v10, %v1111_v4 }
  0x1c   : > { %v384_v22 = vsel %vm288_vm8, 1.0, %v352_v21  ;;  %v353_v23 = vsel %vm321_vm11, -1.0, %v1041_v1  ;;  %v354_v24 = vsel %vm322_vm13, -1.0, %v1041_v1  ;;  %vm291_vm14 = vcmp.eq.s32.totalorder %v255_v11, %v1121_v12 }
  0x1d   : > { %416 = vst [vmem:[#allocation2 + $0x20] sm:$0xff] %v384_v22  ;;  %v385_v25 = vsel %vm289_vm10, 1.0, %v353_v23  ;;  %v386_v26 = vsel %vm290_vm12, 1.0, %v354_v24  ;;  %vm323_vm15 = vcmp.eq.s32.totalorder %v255_v11, %v1111_v4  ;;  %v256_v27 = vadd.s32 64, %v1109_v2 }
  0x1e   : > { %417 = vst [vmem:[#allocation2 + $0x28] sm:$0xff] %v385_v25  ;;  %418 = vst [vmem:[#allocation2 + $0x30] sm:$0xff] %v386_v26  ;;  %v355_v28 = vsel %vm323_vm15, -1.0, %v1041_v1  ;;  %v257_v29 = vadd.s32 72, %v1109_v2  ;;  %v258_v30 = vadd.s32 80, %v1109_v2  ;;  %v259_v31 = vadd.s32 88, %v1109_v2 }
  0x1f   : > { %v387_v32 = vsel %vm291_vm14, 1.0, %v355_v28  ;;  %vm292_vm0 = vcmp.eq.s32.totalorder %v256_v27, %v1121_v12  ;;  %vm324_vm1 = vcmp.eq.s32.totalorder %v256_v27, %v1111_v4  ;;  %v260_v33 = vadd.s32 96, %v1109_v2 }
  0x20   : > { %419 = vst [vmem:[#allocation2 + $0x38] sm:$0xff] %v387_v32  ;;  %v356_v34 = vsel %vm324_vm1, -1.0, %v1041_v1  ;;  %vm293_vm2 = vcmp.eq.s32.totalorder %v257_v29, %v1121_v12  ;;  %vm325_vm3 = vcmp.eq.s32.totalorder %v257_v29, %v1111_v4  ;;  %vm294_vm4 = vcmp.eq.s32.totalorder %v258_v30, %v1121_v12 }
  0x21   : > { %v388_v35 = vsel %vm292_vm0, 1.0, %v356_v34  ;;  %v357_v36 = vsel %vm325_vm3, -1.0, %v1041_v1  ;;  %vm326_vm5 = vcmp.eq.s32.totalorder %v258_v30, %v1111_v4  ;;  %vm295_vm6 = vcmp.eq.s32.totalorder %v259_v31, %v1121_v12 }
  0x22   : > { %420 = vst [vmem:[#allocation2 + $0x40] sm:$0xff] %v388_v35  ;;  %v389_v37 = vsel %vm293_vm2, 1.0, %v357_v36  ;;  %v358_v38 = vsel %vm326_vm5, -1.0, %v1041_v1  ;;  %vm327_vm7 = vcmp.eq.s32.totalorder %v259_v31, %v1111_v4  ;;  %vm296_vm8 = vcmp.eq.s32.totalorder %v260_v33, %v1121_v12 }
  0x23   : > { %421 = vst [vmem:[#allocation2 + $0x48] sm:$0xff] %v389_v37  ;;  %v390_v39 = vsel %vm294_vm4, 1.0, %v358_v38  ;;  %v359_v40 = vsel %vm327_vm7, -1.0, %v1041_v1  ;;  %vm328_vm9 = vcmp.eq.s32.totalorder %v260_v33, %v1111_v4  ;;  %v261_v41 = vadd.s32 104, %v1109_v2 }
  0x24   : > { %422 = vst [vmem:[#allocation2 + $0x50] sm:$0xff] %v390_v39  ;;  %v391_v42 = vsel %vm295_vm6, 1.0, %v359_v40  ;;  %v360_v43 = vsel %vm328_vm9, -1.0, %v1041_v1  ;;  %v262_v44 = vadd.s32 112, %v1109_v2  ;;  %v263_v45 = vadd.s32 120, %v1109_v2 }
  0x25   : > { %423 = vst [vmem:[#allocation2 + $0x58] sm:$0xff] %v391_v42  ;;  %v392_v46 = vsel %vm296_vm8, 1.0, %v360_v43  ;;  %vm297_vm10 = vcmp.eq.s32.totalorder %v261_v41, %v1121_v12  ;;  %vm329_vm11 = vcmp.eq.s32.totalorder %v261_v41, %v1111_v4  ;;  %v264_v47 = vadd.s32 128, %v1109_v2 }
  0x26   : > { %424 = vst [vmem:[#allocation2 + $0x60] sm:$0xff] %v392_v46  ;;  %v361_v48 = vsel %vm329_vm11, -1.0, %v1041_v1  ;;  %vm298_vm12 = vcmp.eq.s32.totalorder %v262_v44, %v1121_v12  ;;  %vm330_vm13 = vcmp.eq.s32.totalorder %v262_v44, %v1111_v4  ;;  %vm299_vm14 = vcmp.eq.s32.totalorder %v263_v45, %v1121_v12 }
  0x27   : > { %v393_v49 = vsel %vm297_vm10, 1.0, %v361_v48  ;;  %v362_v50 = vsel %vm330_vm13, -1.0, %v1041_v1  ;;  %vm331_vm15 = vcmp.eq.s32.totalorder %v263_v45, %v1111_v4  ;;  %vm300_vm0 = vcmp.eq.s32.totalorder %v264_v47, %v1121_v12 }
  0x28   : > { %425 = vst [vmem:[#allocation2 + $0x68] sm:$0xff] %v393_v49  ;;  %v394_v51 = vsel %vm298_vm12, 1.0, %v362_v50  ;;  %v363_v52 = vsel %vm331_vm15, -1.0, %v1041_v1  ;;  %vm332_vm1 = vcmp.eq.s32.totalorder %v264_v47, %v1111_v4  ;;  %v265_v53 = vadd.s32 136, %v1109_v2 }
  0x29   : > { %426 = vst [vmem:[#allocation2 + $0x70] sm:$0xff] %v394_v51  ;;  %v395_v54 = vsel %vm299_vm14, 1.0, %v363_v52  ;;  %v364_v55 = vsel %vm332_vm1, -1.0, %v1041_v1  ;;  %v266_v56 = vadd.s32 144, %v1109_v2  ;;  %v267_v57 = vadd.s32 152, %v1109_v2 }
  0x2a   : > { %427 = vst [vmem:[#allocation2 + $0x78] sm:$0xff] %v395_v54  ;;  %v396_v58 = vsel %vm300_vm0, 1.0, %v364_v55  ;;  %vm301_vm2 = vcmp.eq.s32.totalorder %v265_v53, %v1121_v12  ;;  %vm333_vm3 = vcmp.eq.s32.totalorder %v265_v53, %v1111_v4  ;;  %v268_v59 = vadd.s32 160, %v1109_v2 }
  0x2b   : > { %428 = vst [vmem:[#allocation2 + $0x80] sm:$0xff] %v396_v58  ;;  %v365_v60 = vsel %vm333_vm3, -1.0, %v1041_v1  ;;  %vm302_vm4 = vcmp.eq.s32.totalorder %v266_v56, %v1121_v12  ;;  %vm334_vm5 = vcmp.eq.s32.totalorder %v266_v56, %v1111_v4  ;;  %vm303_vm6 = vcmp.eq.s32.totalorder %v267_v57, %v1121_v12 }
  0x2c   : > { %v397_v61 = vsel %vm301_vm2, 1.0, %v365_v60  ;;  %v366_v62 = vsel %vm334_vm5, -1.0, %v1041_v1  ;;  %vm335_vm7 = vcmp.eq.s32.totalorder %v267_v57, %v1111_v4  ;;  %vm304_vm8 = vcmp.eq.s32.totalorder %v268_v59, %v1121_v12 }
  0x2d   : > { %429 = vst [vmem:[#allocation2 + $0x88] sm:$0xff] %v397_v61  ;;  %v398_v63 = vsel %vm302_vm4, 1.0, %v366_v62  ;;  %v367_v0 = vsel %vm335_vm7, -1.0, %v1041_v1  ;;  %vm336_vm9 = vcmp.eq.s32.totalorder %v268_v59, %v1111_v4  ;;  %v269_v3 = vadd.s32 168, %v1109_v2 }
  0x2e   : > { %430 = vst [vmem:[#allocation2 + $0x90] sm:$0xff] %v398_v63  ;;  %v399_v5 = vsel %vm303_vm6, 1.0, %v367_v0  ;;  %v368_v6 = vsel %vm336_vm9, -1.0, %v1041_v1  ;;  %v270_v7 = vadd.s32 176, %v1109_v2  ;;  %v271_v8 = vadd.s32 184, %v1109_v2 }
  0x2f   : > { %431 = vst [vmem:[#allocation2 + $0x98] sm:$0xff] %v399_v5  ;;  %v400_v9 = vsel %vm304_vm8, 1.0, %v368_v6  ;;  %vm305_vm10 = vcmp.eq.s32.totalorder %v269_v3, %v1121_v12  ;;  %vm337_vm11 = vcmp.eq.s32.totalorder %v269_v3, %v1111_v4  ;;  %v272_v10 = vadd.s32 192, %v1109_v2 }
  0x30   : > { %432 = vst [vmem:[#allocation2 + $0xa0] sm:$0xff] %v400_v9  ;;  %v369_v11 = vsel %vm337_vm11, -1.0, %v1041_v1  ;;  %vm306_vm12 = vcmp.eq.s32.totalorder %v270_v7, %v1121_v12  ;;  %vm338_vm13 = vcmp.eq.s32.totalorder %v270_v7, %v1111_v4  ;;  %vm307_vm14 = vcmp.eq.s32.totalorder %v271_v8, %v1121_v12 }
  0x31   : > { %v401_v13 = vsel %vm305_vm10, 1.0, %v369_v11  ;;  %v370_v14 = vsel %vm338_vm13, -1.0, %v1041_v1  ;;  %vm339_vm15 = vcmp.eq.s32.totalorder %v271_v8, %v1111_v4  ;;  %vm308_vm0 = vcmp.eq.s32.totalorder %v272_v10, %v1121_v12 }
  0x32   : > { %433 = vst [vmem:[#allocation2 + $0xa8] sm:$0xff] %v401_v13  ;;  %v402_v15 = vsel %vm306_vm12, 1.0, %v370_v14  ;;  %v371_v16 = vsel %vm339_vm15, -1.0, %v1041_v1  ;;  %vm340_vm1 = vcmp.eq.s32.totalorder %v272_v10, %v1111_v4  ;;  %v273_v17 = vadd.s32 200, %v1109_v2 }
  0x33   : > { %434 = vst [vmem:[#allocation2 + $0xb0] sm:$0xff] %v402_v15  ;;  %v403_v18 = vsel %vm307_vm14, 1.0, %v371_v16  ;;  %v372_v19 = vsel %vm340_vm1, -1.0, %v1041_v1  ;;  %v274_v20 = vadd.s32 208, %v1109_v2  ;;  %v275_v21 = vadd.s32 216, %v1109_v2 }
  0x34   : > { %435 = vst [vmem:[#allocation2 + $0xb8] sm:$0xff] %v403_v18  ;;  %v404_v22 = vsel %vm308_vm0, 1.0, %v372_v19  ;;  %vm309_vm2 = vcmp.eq.s32.totalorder %v273_v17, %v1121_v12  ;;  %vm341_vm3 = vcmp.eq.s32.totalorder %v273_v17, %v1111_v4  ;;  %v276_v23 = vadd.s32 224, %v1109_v2 }
  0x35   : > { %436 = vst [vmem:[#allocation2 + $0xc0] sm:$0xff] %v404_v22  ;;  %v373_v24 = vsel %vm341_vm3, -1.0, %v1041_v1  ;;  %vm310_vm4 = vcmp.eq.s32.totalorder %v274_v20, %v1121_v12  ;;  %vm342_vm5 = vcmp.eq.s32.totalorder %v274_v20, %v1111_v4  ;;  %vm311_vm6 = vcmp.eq.s32.totalorder %v275_v21, %v1121_v12 }
  0x36   : > { %v405_v25 = vsel %vm309_vm2, 1.0, %v373_v24  ;;  %v374_v26 = vsel %vm342_vm5, -1.0, %v1041_v1  ;;  %vm343_vm7 = vcmp.eq.s32.totalorder %v275_v21, %v1111_v4  ;;  %vm312_vm8 = vcmp.eq.s32.totalorder %v276_v23, %v1121_v12 }
  0x37   : > { %437 = vst [vmem:[#allocation2 + $0xc8] sm:$0xff] %v405_v25  ;;  %v406_v27 = vsel %vm310_vm4, 1.0, %v374_v26  ;;  %v375_v28 = vsel %vm343_vm7, -1.0, %v1041_v1  ;;  %vm344_vm9 = vcmp.eq.s32.totalorder %v276_v23, %v1111_v4  ;;  %v277_v29 = vadd.s32 232, %v1109_v2 }
  0x38   : > { %438 = vst [vmem:[#allocation2 + $0xd0] sm:$0xff] %v406_v27  ;;  %v407_v30 = vsel %vm311_vm6, 1.0, %v375_v28  ;;  %v376_v31 = vsel %vm344_vm9, -1.0, %v1041_v1  ;;  %v278_v32 = vadd.s32 240, %v1109_v2  ;;  %v279_v33 = vadd.s32 248, %v1109_v2 }
  0x39   : > { %439 = vst [vmem:[#allocation2 + $0xd8] sm:$0xff] %v407_v30  ;;  %v408_v34 = vsel %vm312_vm8, 1.0, %v376_v31  ;;  %vm313_vm10 = vcmp.eq.s32.totalorder %v277_v29, %v1121_v12  ;;  %vm345_vm11 = vcmp.eq.s32.totalorder %v277_v29, %v1111_v4 }
  0x3a   : > { %440 = vst [vmem:[#allocation2 + $0xe0] sm:$0xff] %v408_v34  ;;  %v377_v35 = vsel %vm345_vm11, -1.0, %v1041_v1  ;;  %vm314_vm12 = vcmp.eq.s32.totalorder %v278_v32, %v1121_v12  ;;  %vm346_vm13 = vcmp.eq.s32.totalorder %v278_v32, %v1111_v4  ;;  %vm315_vm14 = vcmp.eq.s32.totalorder %v279_v33, %v1121_v12 }
  0x3b   : > { %v409_v36 = vsel %vm313_vm10, 1.0, %v377_v35  ;;  %v378_v37 = vsel %vm346_vm13, -1.0, %v1041_v1  ;;  %vm347_vm15 = vcmp.eq.s32.totalorder %v279_v33, %v1111_v4 }
  0x3c   : > { %441 = vst [vmem:[#allocation2 + $0xe8] sm:$0xff] %v409_v36  ;;  %v410_v2 = vsel %vm314_vm12, 1.0, %v378_v37  ;;  %v379_v38 = vsel %vm347_vm15, -1.0, %v1041_v1 }
  0x3d   : > { %442 = vst [vmem:[#allocation2 + $0xf0] sm:$0xff] %v410_v2  ;;  %v411_v39 = vsel %vm315_vm14, 1.0, %v379_v38 }
  0x3e   : > { %443 = vst [vmem:[#allocation2 + $0xf8] sm:$0xff] %v411_v39 }
  0x3f PF: > { %v474_v40 = vld [vmem:[#allocation2 + $0x80] sm:$0xff]  ;;  %v475_v41 = vld [vmem:[#allocation2 + $0x88] sm:$0xff]  ;;  %v476_v45 = vld [vmem:[#allocation2 + $0x90] sm:$0xff]  ;;  %v1042_v2 = vmov 0.0  }
  0x40   : > { %v895_v43 = vpack.c.bf16 %v475_v41, %v474_v40  ;;  %v477_v12 = vld [vmem:[#allocation2 + $0x98] sm:$0xff]  ;;  %v478_v4 = vld [vmem:[#allocation2 + $0xa0] sm:$0xff]  ;;  %v479_v50 = vld [vmem:[#allocation2 + $0xa8] sm:$0xff] }
  0x41   : > { %v899_v47 = vpack.c.bf16 %v477_v12, %v476_v45  ;;  %v903_v51 = vpack.c.bf16 %v479_v50, %v478_v4  ;;  %v462_v52 = vld [vmem:[#allocation2 + $0x20] sm:$0xff]  ;;  %v463_v53 = vld [vmem:[#allocation2 + $0x28] sm:$0xff]  ;;  %v480_v54 = vld [vmem:[#allocation2 + $0xb0] sm:$0xff] }
  0x42   : > { %896 = vmatprep.subr.bf16.mxu0 %v895_v43  ;;  %927 = vmatprep.subr.bf16.mxu1 %v895_v43  ;;  %v481_v55 = vld [vmem:[#allocation2 + $0xb8] sm:$0xff]  ;;  %v905_v56 = vpack.c.bf16 %v463_v53, %v462_v52  ;;  %v464_v58 = vld [vmem:[#allocation2 + $0x30] sm:$0xff]  ;;  %v482_v60 = vld [vmem:[#allocation2 + $0xc0] sm:$0xff] }
  0x43   : > { %v907_v57 = vpack.c.bf16 %v481_v55, %v480_v54  ;;  %v465_v59 = vld [vmem:[#allocation2 + $0x38] sm:$0xff]  ;;  %v483_v61 = vld [vmem:[#allocation2 + $0xc8] sm:$0xff]  ;;  %v466_v5 = vld [vmem:[#allocation2 + $0x40] sm:$0xff] }
  0x44   : > { %v458_v42 = vld [vmem:[#allocation2] sm:$0xff]  ;;  %v459_v44 = vld [vmem:[#allocation2 + $0x8] sm:$0xff]  ;;  %v909_v0 = vpack.c.bf16 %v465_v59, %v464_v58  ;;  %v911_v3 = vpack.c.bf16 %v483_v61, %v482_v60  ;;  %v484_v7 = vld [vmem:[#allocation2 + $0xd0] sm:$0xff] }
  0x45   : > { %v897_v46 = vpack.c.bf16 %v459_v44, %v458_v42  ;;  %v460_v48 = vld [vmem:[#allocation2 + $0x10] sm:$0xff]  ;;  %v461_v49 = vld [vmem:[#allocation2 + $0x18] sm:$0xff]  ;;  %v446_v62 = vld [vmem:[%s1104_s3 + $0x8] sm:$0xff] }
  0x46   : > { %v901_v1 = vpack.c.bf16 %v461_v49, %v460_v48  ;;  %554 = vmatprep.mubr.f32.mxu0 %v446_v62  ;;  %v450_v63 = vld [vmem:[%s1104_s3 + $0x28] sm:$0xff]  ;;  %v485_v8 = vld [vmem:[#allocation2 + $0xd8] sm:$0xff]  ;;  %v468_v11 = vld [vmem:[#allocation2 + $0x50] sm:$0xff] }
  0x47   : > { %898 = vmatpush3.bf16.msra.mxu0 %v897_v46  ;;  %935 = vmatpush3.bf16.msra.mxu1 %v897_v46  ;;  %v467_v6 = vld [vmem:[#allocation2 + $0x48] sm:$0xff]  ;;  %v915_v10 = vpack.c.bf16 %v485_v8, %v484_v7  ;;  %v469_v13 = vld [vmem:[#allocation2 + $0x58] sm:$0xff]  ;;  %v486_v14 = vld [vmem:[#allocation2 + $0xe0] sm:$0xff] }
  0x48   : > { %900 = vmatprep.subr.bf16.mxu0 %v899_v47  ;;  %928 = vmatprep.subr.bf16.mxu1 %v899_v47  ;;  %v913_v9 = vpack.c.bf16 %v467_v6, %v466_v5  ;;  %v487_v15 = vld [vmem:[#allocation2 + $0xe8] sm:$0xff]  ;;  %v917_v16 = vpack.c.bf16 %v469_v13, %v468_v11  ;;  %v470_v18 = vld [vmem:[#allocation2 + $0x60] sm:$0xff]  ;;  %v488_v20 = vld [vmem:[#allocation2 + $0xf0] sm:$0xff] }
  0x49   : > { %564 = vmatprep.mubr.f32.mxu1 %v450_v63  ;;  %v919_v17 = vpack.c.bf16 %v487_v15, %v486_v14  ;;  %v471_v19 = vld [vmem:[#allocation2 + $0x68] sm:$0xff]  ;;  %v489_v21 = vld [vmem:[#allocation2 + $0xf8] sm:$0xff]  ;;  %v472_v24 = vld [vmem:[#allocation2 + $0x70] sm:$0xff] }
  0x4a   : > { %v921_v22 = vpack.c.bf16 %v471_v19, %v470_v18  ;;  %v923_v23 = vpack.c.bf16 %v489_v21, %v488_v20  ;;  %v473_v25 = vld [vmem:[#allocation2 + $0x78] sm:$0xff]  ;;  %v445_v27 = vld [vmem:[%s1104_s3] sm:$0xff]  ;;  %v447_v31 = vld [vmem:[%s1104_s3 + $0x10] sm:$0xff] }
  0x4b   : > { %902 = vmatpush3.bf16.msra.mxu0 %v901_v1  ;;  %936 = vmatpush3.bf16.msra.mxu1 %v901_v1  ;;  %v925_v26 = vpack.c.bf16 %v473_v25, %v472_v24  ;;  %v449_v28 = vld [vmem:[%s1104_s3 + $0x20] sm:$0xff]  ;;  %v448_v29 = vld [vmem:[%s1104_s3 + $0x18] sm:$0xff]  ;;  %v451_v32 = vld [vmem:[%s1104_s3 + $0x30] sm:$0xff] }
  0x4c   : > { %904 = vmatprep.subr.bf16.mxu0 %v903_v51  ;;  %929 = vmatprep.subr.bf16.mxu1 %v903_v51  ;;  %v452_v30 = vld [vmem:[%s1104_s3 + $0x38] sm:$0xff]  ;;  %v1254_v33 = vld [vmem:[%s1094_s24] sm:$0xff] }
  0x4d   : > { %v454_v34 = vunpack.c.0.s8 %v1254_v33  ;;  %v455_v35 = vunpack.c.1.s8 %v1254_v33  ;;  %v456_v37 = vunpack.c.2.s8 %v1254_v33  ;;  %v457_v43 = vunpack.c.3.s8 %v1254_v33  ;;  %v731_v52 = vld [vmem:[%s1099_s27 + $0x4] sm:$0x1] }
  0x4f   : > { %906 = vmatpush3.bf16.msra.mxu0 %v905_v56  ;;  %937 = vmatpush3.bf16.msra.mxu1 %v905_v56  ;;  %vm1258_vm0 = vcmp.eq.s32.totalorder %v454_v34, 1  ;;  %vm1266_vm1 = vcmp.eq.s32.totalorder %v455_v35, 1  ;;  %vm1273_vm2 = vcmp.eq.s32.totalorder %v456_v37, 1  ;;  %vm1281_vm3 = vcmp.eq.s32.totalorder %v457_v43, 1 }
  0x50   : > { %908 = vmatprep.subr.bf16.mxu0 %v907_v57  ;;  %930 = vmatprep.subr.bf16.mxu1 %v907_v57  ;;  %v844_v38 = vsel %vm1258_vm0, 1.0, %v1042_v2  ;;  %v845_v40 = vsel %vm1266_vm1, 1.0, %v1042_v2  ;;  %v846_v44 = vsel %vm1273_vm2, 1.0, %v1042_v2  ;;  %v847_v46 = vsel %vm1281_vm3, 1.0, %v1042_v2 }
  0x51   : > { %v732_v42 = vadd.f32 %v845_v40, %v844_v38  ;;  %vm1294_vm4 = vcmp.eq.s32.totalorder %v454_v34, 0  ;;  %vm1300_vm6 = vcmp.eq.s32.totalorder %v456_v37, 0  ;;  %vm1328_vm13 = vcmp.eq.s32.totalorder %v455_v35, 0 }
  0x53   : > { %910 = vmatpush3.bf16.msra.mxu0 %v909_v0  ;;  %938 = vmatpush3.bf16.msra.mxu1 %v909_v0  ;;  %v733_v12 = vadd.f32 %v846_v44, %v732_v42 }
  0x54   : > { %912 = vmatprep.subr.bf16.mxu0 %v911_v3  ;;  %931 = vmatprep.subr.bf16.mxu1 %v911_v3 }
  0x55   : > { %v734_v47 = vadd.f32 %v847_v46, %v733_v12 }
  0x57   : > { %914 = vmatpush3.bf16.msra.mxu0 %v913_v9  ;;  %939 = vmatpush3.bf16.msra.mxu1 %v913_v9  ;;  %v735_v48 = vrot.slane %v734_v47, 4 }
  0x58   : > { %916 = vmatprep.subr.bf16.mxu0 %v915_v10  ;;  %932 = vmatprep.subr.bf16.mxu1 %v915_v10 }
  0x59   : > { %v736_v49 = vadd.f32 %v735_v48, %v734_v47 }
  0x5b   : > { %918 = vmatpush3.bf16.msra.mxu0 %v917_v16  ;;  %940 = vmatpush3.bf16.msra.mxu1 %v917_v16  ;;  %v737_v4 = vrot.slane %v736_v49, 2 }
  0x5c   : > { %920 = vmatprep.subr.bf16.mxu0 %v919_v17  ;;  %933 = vmatprep.subr.bf16.mxu1 %v919_v17 }
  0x5d   : > { %v738_v50 = vadd.f32 %v737_v4, %v736_v49 }
  0x5f   : > { %922 = vmatpush3.bf16.msra.mxu0 %v921_v22  ;;  %941 = vmatpush3.bf16.msra.mxu1 %v921_v22  ;;  %v739_v1 = vrot.slane %v738_v50, 1 }
  0x60   : > { %924 = vmatprep.subr.bf16.mxu0 %v923_v23  ;;  %934 = vmatprep.subr.bf16.mxu1 %v923_v23 }
  0x61   : > { %v740_v51 = vadd.f32 %v739_v1, %v738_v50 }
  0x63   : > { %926 = vmatpush3.bf16.msra.mxu0 %v925_v26  ;;  %942 = vmatpush3.bf16.msra.mxu1 %v925_v26  ;;  %v741_v53 = vadd.f32 %v740_v51, %v731_v52 }
  0x65   : > { %742 = vst [vmem:[%s1099_s27 + $0x4] sm:$0x1] %v741_v53 }
  0x66   : > { %555 = vmatmul.mubr.f32.vlgmr.msra.gmra.mrb[0].mxu0 %v445_v27  ;;  %565 = vmatmul.mubr.f32.vlgmr.msra.gmra.mrb[0].mxu1 %v449_v28 }
  0x67   : > { %559 = vmatprep.mubr.f32.mxu0 %v448_v29  ;;  %569 = vmatprep.mubr.f32.mxu1 %v452_v30 }
  0x6a   : > { %560 = vmatmul.mubr.f32.gmra.mrb[2].mxu0 %v447_v31  ;;  %570 = vmatmul.mubr.f32.gmra.mrb[2].mxu1 %v451_v32 }
 0x139   : > { %v883_v54 = vpop.f32.mrb[0].mxu0  ;;  %v889_v55 = vpop.f32.mrb[0].mxu1 }
 0x13a   : > { %v884_v56 = vpop.f32.mrb[1].mxu0  ;;  %v890_v57 = vpop.f32.mrb[1].mxu1 }
 0x13b   : > { %v1290_v58 = vadd.f32 %v884_v56, %v883_v54  ;;  %v1292_v59 = vadd.f32 %v890_v57, %v889_v55  ;;  %v687_v54 = vld [vmem:[%s1099_s27 + $0x2] sm:$0x1] }
 0x13d   : > { %v583_v61 = vand.u32 2147483647, %v1290_v58  ;;  %vm639_vm5 = vcmp.le.f32.partialorder %v1290_v58, 0.0  ;;  %v886_v62 = vpop.f32.mrb[2].mxu0  ;;  %v585_v0 = vand.u32 2147483647, %v1292_v59 }
 0x13e   : > { %vm641_vm7 = vcmp.le.f32.partialorder %v1292_v59, 0.0  ;;  %v892_v3 = vpop.f32.mrb[2].mxu1  ;;  %vm635_vm8 = vcmp.gt.f32.partialorder %v1290_v58, 0.0  ;;  %vm1311_vm9 = vmand %vm1294_vm4, %vm639_vm5  ;;  %v887_v7 = vpop.f32.mrb[3].mxu0  ;;  %vm637_vm10 = vcmp.gt.f32.partialorder %v1292_v59, 0.0  ;;  %v617_v6 = vmul.f32 0.5, %v1292_v59 }
 0x13f   : > { %v587_v5 = vsub.f32 0.0, %v583_v61  ;;  %v893_v8 = vpop.f32.mrb[3].mxu1  ;;  %v589_v9 = vsub.f32 0.0, %v585_v0  ;;  %v1318_v10 = vadd.f32 %v887_v7, %v886_v62  ;;  %vm1322_vm11 = vmand %vm1300_vm6, %vm641_vm7  ;;  %v840_v21 = vsel %vm1311_vm9, 1.0, %v1042_v2 }
 0x140   : > { %vm675_vm12 = vmand %vm1258_vm0, %vm635_vm8  ;;  %v1339_v17 = vadd.f32 %v893_v8, %v892_v3  ;;  %v842_v29 = vsel %vm1322_vm11, 1.0, %v1042_v2  ;;  %v611_v56 = vmul.f32 0.5, %v583_v61  ;;  %v711_v3 = vld [vmem:[%s1099_s27 + $0x3] sm:$0x1]  ;;  %v615_v8 = vmul.f32 0.5, %v1290_v58 }
 0x141   : > { %v591_v11 = vmul.f32 1.442695, %v587_v5  ;;  %v595_v14 = vmul.f32 1.442695, %v589_v9  ;;  %vm677_vm14 = vmand %vm1273_vm2, %vm637_vm10  ;;  %v584_v16 = vand.u32 2147483647, %v1318_v10 }
 0x142   : > { %vm636_vm15 = vcmp.gt.f32.partialorder %v1318_v10, 0.0  ;;  %vm640_vm5 = vcmp.le.f32.partialorder %v1318_v10, 0.0  ;;  %v836_v18 = vsel %vm675_vm12, 1.0, %v1042_v2  ;;  %v586_v24 = vand.u32 2147483647, %v1339_v17 }
 0x143   : > { %985 = vpow2.f32 %v591_v11  ;;  %vm676_vm7 = vmand %vm1266_vm1, %vm636_vm15  ;;  %v588_v19 = vsub.f32 0.0, %v584_v16  ;;  %v838_v25 = vsel %vm677_vm14, 1.0, %v1042_v2  ;;  %vm1353_vm10 = vcmp.eq.s32.totalorder %v457_v43, 0 }
 0x144   : > { %987 = vpow2.f32 %v595_v14  ;;  %v837_v20 = vsel %vm676_vm7, 1.0, %v1042_v2  ;;  %vm700_vm8 = vmand %vm1328_vm13, %vm640_vm5  ;;  %v590_v30 = vsub.f32 0.0, %v586_v24  ;;  %vm638_vm9 = vcmp.gt.f32.partialorder %v1339_v17, 0.0 }
 0x145   : > { %v688_v22 = vadd.f32 %v837_v20, %v836_v18  ;;  %v841_v23 = vsel %vm700_vm8, 1.0, %v1042_v2  ;;  %v593_v26 = vmul.f32 1.442695, %v588_v19  ;;  %vm642_vm12 = vcmp.le.f32.partialorder %v1339_v17, 0.0  ;;  %vm678_vm14 = vmand %vm1281_vm3, %vm638_vm9 }
 0x146   : > { %v712_v27 = vadd.f32 %v841_v23, %v840_v21  ;;  %v597_v33 = vmul.f32 1.442695, %v590_v30  ;;  %v839_v34 = vsel %vm678_vm14, 1.0, %v1042_v2  ;;  %vm702_vm15 = vmand %vm1353_vm10, %vm642_vm12  ;;  %v613_v5 = vmul.f32 0.5, %v585_v0 }
 0x147   : > { %989 = vpow2.f32 %v593_v26  ;;  %v689_v31 = vadd.f32 %v838_v25, %v688_v22  ;;  %v843_v37 = vsel %vm702_vm15, 1.0, %v1042_v2  ;;  %v627_v19 = vadd.f32 %v615_v8, %v611_v56 }
 0x148   : > { %v713_v32 = vadd.f32 %v842_v29, %v712_v27  ;;  %991 = vpow2.f32 %v597_v33  ;;  %v629_v20 = vadd.f32 %v617_v6, %v613_v5  ;;  %v612_v0 = vmul.f32 0.5, %v584_v16 }
 0x149   : > { %v690_v35 = vadd.f32 %v839_v34, %v689_v31  ;;  %v619_v59 = vsub.f32 %v611_v56, %v615_v8  ;;  %v616_v23 = vmul.f32 0.5, %v1318_v10  ;;  %v621_v26 = vsub.f32 %v613_v5, %v617_v6  ;;  %v663_v56 = vld [vmem:[%s1099_s27 + $0x1] sm:$0x1] }
 0x14a   : > { %v714_v38 = vadd.f32 %v843_v37, %v713_v32  ;;  %v614_v29 = vmul.f32 0.5, %v586_v24  ;;  %v618_v30 = vmul.f32 0.5, %v1339_v17 }
 0x14b   : > { %v691_v42 = vrot.slane %v690_v35, 4  ;;  %v620_v16 = vsub.f32 %v612_v0, %v616_v23  ;;  %v628_v33 = vadd.f32 %v616_v23, %v612_v0 }
 0x14c   : > { %v715_v12 = vrot.slane %v714_v38, 4  ;;  %v622_v10 = vsub.f32 %v614_v29, %v618_v30 }
 0x14d   : > { %v986_v40 = vpop.eup %985  ;;  %v692_v47 = vadd.f32 %v691_v42, %v690_v35 }
 0x14e   : > { %v988_v43 = vpop.eup %987  ;;  %v599_v44 = vadd.f32 1.0, %v986_v40  ;;  %v716_v48 = vadd.f32 %v715_v12, %v714_v38  ;;  %v630_v40 = vadd.f32 %v618_v30, %v614_v29 }
 0x14f   : > { %v601_v46 = vadd.f32 1.0, %v988_v43  ;;  %v693_v49 = vrot.slane %v692_v47, 2 }
 0x150   : > { %993 = vlog2.f32 %v599_v44  ;;  %v717_v4 = vrot.slane %v716_v48, 2 }
 0x151   : > { %995 = vlog2.f32 %v601_v46  ;;  %v990_v50 = vpop.eup %989  ;;  %v694_v1 = vadd.f32 %v693_v49, %v692_v47 }
 0x152   : > { %v600_v51 = vadd.f32 1.0, %v990_v50  ;;  %v718_v2 = vadd.f32 %v717_v4, %v716_v48  ;;  %v992_v53 = vpop.eup %991 }
 0x153   : > { %v695_v52 = vrot.slane %v694_v1, 1  ;;  %v602_v57 = vadd.f32 1.0, %v992_v53 }
 0x154   : > { %997 = vlog2.f32 %v600_v51  ;;  %v719_v55 = vrot.slane %v718_v2, 1 }
 0x155   : > { %v696_v62 = vadd.f32 %v695_v52, %v694_v1  ;;  %999 = vlog2.f32 %v602_v57 }
 0x156   : > { %v720_v7 = vadd.f32 %v719_v55, %v718_v2  ;;  %v647_v55 = vld [vmem:[%s1099_s27] sm:$0x1] }
 0x157   : > { %v697_v9 = vadd.f32 %v696_v62, %v687_v54 }
 0x158   : > { %v721_v13 = vadd.f32 %v720_v7, %v711_v3 }
 0x159   : > { %698 = vst [vmem:[%s1099_s27 + $0x2] sm:$0x1] %v697_v9 }
 0x15a   : > { %v994_v11 = vpop.eup %993  ;;  %722 = vst [vmem:[%s1099_s27 + $0x3] sm:$0x1] %v721_v13 }
 0x15b   : > { %v996_v14 = vpop.eup %995  ;;  %v604_v18 = vmul.f32 0.6931472, %v994_v11 }
 0x15c   : > { %v608_v61 = vmul.f32 0.6931472, %v996_v14 }
 0x15d   : > { %v631_v21 = vadd.f32 %v627_v19, %v604_v18  ;;  %v623_v31 = vadd.f32 %v619_v59, %v604_v18 }
 0x15e   : > { %v633_v22 = vadd.f32 %v629_v20, %v608_v61  ;;  %v998_v25 = vpop.eup %997  ;;  %v625_v35 = vadd.f32 %v621_v26, %v608_v61 }
 0x15f   : > { %v659_v58 = vsel %vm1294_vm4, %v631_v21, 0.0  ;;  %v606_v32 = vmul.f32 0.6931472, %v998_v25  ;;  %v1000_v34 = vpop.eup %999  ;;  %v643_v63 = vsel %vm1258_vm0, %v623_v31, 0.0 }
 0x160   : > { %v661_v27 = vsel %vm1300_vm6, %v633_v22, 0.0  ;;  %v610_v38 = vmul.f32 0.6931472, %v1000_v34  ;;  %v645_v46 = vsel %vm1273_vm2, %v625_v35, 0.0 }
 0x161   : > { %v624_v60 = vadd.f32 %v620_v16, %v606_v32  ;;  %v632_v37 = vadd.f32 %v628_v33, %v606_v32 }
 0x162   : > { %v626_v44 = vadd.f32 %v622_v10, %v610_v38  ;;  %v634_v12 = vadd.f32 %v630_v40, %v610_v38 }
 0x163   : > { %v644_v42 = vsel %vm1266_vm1, %v624_v60, 0.0  ;;  %v660_v17 = vsel %vm1328_vm13, %v632_v37, 0.0 }
 0x164   : > { %v648_v24 = vadd.f32 %v644_v42, %v643_v63  ;;  %v664_v43 = vadd.f32 %v660_v17, %v659_v58  ;;  %v662_v48 = vsel %vm1353_vm10, %v634_v12, 0.0  ;;  %v646_v39 = vsel %vm1281_vm3, %v626_v44, 0.0 }
 0x166   : > { %v649_v47 = vadd.f32 %v648_v24, %v645_v46  ;;  %v665_v36 = vadd.f32 %v664_v43, %v661_v27 }
 0x168   : > { %v650_v49 = vadd.f32 %v649_v47, %v646_v39  ;;  %v666_v15 = vadd.f32 %v665_v36, %v662_v48 }
 0x16a   : > { %v651_v4 = vrot.slane %v650_v49, 4  ;;  %v667_v50 = vrot.slane %v666_v15, 4 }
 0x16c   : > { %v652_v1 = vadd.f32 %v651_v4, %v650_v49  ;;  %v668_v51 = vadd.f32 %v667_v50, %v666_v15 }
 0x16e   : > { %v653_v41 = vrot.slane %v652_v1, 2  ;;  %v669_v2 = vrot.slane %v668_v51, 2 }
 0x170   : > { %v654_v52 = vadd.f32 %v653_v41, %v652_v1  ;;  %v670_v53 = vadd.f32 %v669_v2, %v668_v51 }
 0x172   : > { %v655_v28 = vrot.slane %v654_v52, 1  ;;  %v671_v54 = vrot.slane %v670_v53, 1 }
 0x174   : > { %v656_v57 = vadd.f32 %v655_v28, %v654_v52  ;;  %v672_v62 = vadd.f32 %v671_v54, %v670_v53 }
 0x176   : > { %v657_v45 = vadd.f32 %v656_v57, %v647_v55  ;;  %v673_v3 = vadd.f32 %v672_v62, %v663_v56 }
 0x178   : > { %658 = vst [vmem:[%s1099_s27] sm:$0x1] %v657_v45  ;;  %674 = vst [vmem:[%s1099_s27 + $0x1] sm:$0x1] %v673_v3 }
 0x179 PF: > { %s12_s13 = sadd.s32 1, %s1039_s13   ;;  %s1444_s9 = smov %s1031_s11 }
 0x17a   : > { %p9_p10 = scmp.ge.s32.totalorder %s12_s13, 6   ;;  %s1445_s10 = smov %s1035_s12 }
 0x17b   : > { %s1446_s11 = smov %s1449_s14  ;;  %s1447_s12 = smov %s1453_s15 }
 0x17c   :  { %11 = sbr.rel (!%p9_p10) target bundleno = 3 (0x3), region = 65 }

</bundles_post_ra>
